<compile_context>
chip_gen: v5e
topology: v5e:2x2
jax: 0.10.0
libtpu: 0.0.40
codegen_flags: <defaults>
</compile_context>

<pallas_src>
import functools

import numpy as np
import jax
import jax.numpy as jnp
from jax.experimental import pallas as pl
from jax.experimental.pallas import tpu as pltpu


def _sample_loss_kernel(x_ref, y_ref, len_ref, out_ref, *, batch_size):
    x = x_ref[...].astype(jnp.float32)            # (B, C); cast in VMEM, not HBM
    y = y_ref[...]                                # (B, K) int32
    B, C = x.shape
    K = y.shape[1]

    # Broadcast per-row lengths from SMEM scalars.  Rows i >= batch_size keep
    # length 0 and therefore contribute exactly 0 to the loss (prod == 1).
    row_iota = jax.lax.broadcasted_iota(jnp.int32, (B, K), 0)
    col_iota = jax.lax.broadcasted_iota(jnp.int32, (B, K), 1)
    lens_bcast = jnp.zeros((B, K), jnp.int32)
    if batch_size <= 16:
        for i in range(batch_size):               # static unroll, tiny bs
            lens_bcast = jnp.where(row_iota == i, len_ref[i], lens_bcast)
    else:
        def lens_body(i, lb):
            return jnp.where(row_iota == i, len_ref[i], lb)
        lens_bcast = jax.lax.fori_loop(0, batch_size, lens_body, lens_bcast)

    # Fold validity into the labels once: invalid positions become -1, a
    # sentinel outside [0, C), so the count loop is one compare per column.
    valid = col_iota < lens_bcast                 # (B, K) bool
    y_masked = jnp.where(valid, y, -1)            # (B, K) int32

    # counts[i, c] = #{ valid j : y[i, j] == c }, accumulated in int32 over
    # independent accumulators (short dependency chains), cast to f32 once.
    c_iota = jax.lax.broadcasted_iota(jnp.int32, (B, C), 1)
    if K <= 32:
        n_acc = min(4, K)
        accs = [jnp.zeros((B, C), jnp.int32) for _ in range(n_acc)]
        for j in range(K):
            yj = y_masked[:, j:j + 1]             # (B, 1)
            accs[j % n_acc] = accs[j % n_acc] + (c_iota == yj).astype(jnp.int32)
        # Tree-sum the accumulators.
        while len(accs) > 1:
            accs = [accs[i] + accs[i + 1] for i in range(0, len(accs) - 1, 2)] + \
                   ([accs[-1]] if len(accs) % 2 else [])
        counts_i32 = accs[0]
    else:
        # Large K: bound live ranges with a fori_loop (modest unroll).
        def body(j, acc):
            yj = jax.lax.dynamic_slice_in_dim(y_masked, j, 1, axis=1)
            return acc + (c_iota == yj).astype(jnp.int32)
        counts_i32 = jax.lax.fori_loop(0, K, body, jnp.zeros((B, C), jnp.int32),
                                       unroll=4)
    counts = counts_i32.astype(jnp.float32)       # single bool/int -> f32 cast

    # prod_i = prod_c (1 - x[i, c])^counts[i, c]
    #        = exp( sum_c counts[i, c] * log(1 - x[i, c]) )
    # Guard counts == 0 lanes so x == 1.0 cannot produce 0 * (-inf) = NaN.
    has = counts > 0.0
    safe_x = jnp.where(has, x, 0.0)               # log(1 - 0) = 0 on unused lanes
    log_terms = counts * jnp.log(1.0 - safe_x)    # EUP transcendental (free slot)
    log_prod = jnp.sum(log_terms, axis=1, keepdims=True)   # single lane reduce
    prod = jnp.exp(log_prod)                      # (B, 1)

    # loss = sum_i (1 - prod_i); rows >= batch_size have prod == 1 -> add 0.
    loss_col = jnp.sum(1.0 - prod, axis=0, keepdims=True)  # (1, 1)
    out_ref[0] = loss_col[0, 0]                   # scalar out via SMEM


def sample_loss(x, y, lengths):
    """x: (B, C) float, y: (B, K) int, lengths: (L,) int.  Returns (1,) float32."""
    B, C = x.shape
    _, K = y.shape
    L = lengths.shape[0]
    batch_size = L // 8                           # static, mirrors len(lengths) // 8
    assert batch_size >= 1 and B >= batch_size

    # Conditional casts only (no-ops for the expected int32 inputs); no slices
    # or reshapes — the kernel masks unused rows itself.
    if y.dtype != jnp.int32:
        y = y.astype(jnp.int32)
    if lengths.dtype != jnp.int32:
        lengths = lengths.astype(jnp.int32)

    kernel = functools.partial(_sample_loss_kernel, batch_size=batch_size)
    out = pl.pallas_call(
        kernel,
        out_shape=jax.ShapeDtypeStruct((1,), jnp.float32),
        in_specs=[
            pl.BlockSpec(memory_space=pltpu.MemorySpace.VMEM),   # x  (B, C)
            pl.BlockSpec(memory_space=pltpu.MemorySpace.VMEM),   # y  (B, K)
            pl.BlockSpec(memory_space=pltpu.MemorySpace.SMEM),   # lengths (L,)
        ],
        out_specs=pl.BlockSpec(memory_space=pltpu.MemorySpace.SMEM),
    )(x, y, lengths)
    return out                                    # shape (1,), matches .unsqueeze(0)


if __name__ == "__main__":
    key = jax.random.PRNGKey(0)
    kx, ky, kl = jax.random.split(key, 3)

    # Small shapes consistent with the forward pass:
    #   L = 16 -> batch_size = 2 samples actually accumulated.
    B, C, K, L = 4, 16, 8, 16
    x = jax.random.uniform(kx, (B, C), dtype=jnp.float32, minval=0.0, maxval=1.0)
    y = jax.random.randint(ky, (B, K), 0, C, dtype=jnp.int32)
    lengths = jax.random.randint(kl, (L,), 1, K + 1, dtype=jnp.int32)

    out = jax.block_until_ready(sample_loss(x, y, lengths))

    # Pure-numpy reference mirroring the PyTorch loop exactly.
    xn, yn, ln = np.asarray(x), np.asarray(y), np.asarray(lengths)
    loss = 0.0
    for i in range(L // 8):
        vals = 1.0 - xn[i][yn[i][: ln[i]]]
        prod = 1.0
        for v in vals:
            prod = prod * v
        loss += 1.0 - prod
    ref = np.array([loss], dtype=np.float32)

    assert out.shape == (1,)
    np.testing.assert_allclose(np.asarray(out), ref, rtol=1e-5, atol=1e-5)
    print("KERNEL_OK")
</pallas_src>

<mosaic_0001>
module attributes {stable_mosaic.version = 11 : i64} {
  func.func @_sample_loss_kernel(%arg0: memref<4x16xf32, #tpu.memory_space<vmem>>, %arg1: memref<4x8xi32, #tpu.memory_space<vmem>>, %arg2: memref<16xi32, #tpu.memory_space<smem>>, %arg3: memref<1xf32, #tpu.memory_space<smem>>) attributes {dimension_semantics = [], scalar_prefetch = 0 : i64, scratch_operands = 0 : i64, tpu.core_type = #tpu.core_type<tc>} {
    %c0 = arith.constant 0 : index
    %c0_0 = arith.constant 0 : index
    %0 = vector.load %arg0[%c0, %c0_0] : memref<4x16xf32, #tpu.memory_space<vmem>>, vector<4x16xf32>
    %c0_1 = arith.constant 0 : index
    %c0_2 = arith.constant 0 : index
    %1 = vector.load %arg1[%c0_1, %c0_2] : memref<4x8xi32, #tpu.memory_space<vmem>>, vector<4x8xi32>
    %2 = tpu.iota {dimensions = array<i32: 0>} : vector<4x8xi32>
    %3 = tpu.iota {dimensions = array<i32: 1>} : vector<4x8xi32>
    %c0_i32 = arith.constant 0 : i32
    %4 = vector.broadcast %c0_i32 : i32 to vector<4x8xi32>
    %c0_i32_3 = arith.constant 0 : i32
    %5 = vector.broadcast %c0_i32_3 : i32 to vector<4x8xi32>
    %6 = arith.cmpi eq, %2, %5 : vector<4x8xi32>
    %c0_4 = arith.constant 0 : index
    %7 = memref.load %arg2[%c0_4] : memref<16xi32, #tpu.memory_space<smem>>
    %8 = vector.broadcast %7 : i32 to vector<4x8xi32>
    %9 = arith.select %6, %8, %4 : vector<4x8xi1>, vector<4x8xi32>
    %c1_i32 = arith.constant 1 : i32
    %10 = vector.broadcast %c1_i32 : i32 to vector<4x8xi32>
    %11 = arith.cmpi eq, %2, %10 : vector<4x8xi32>
    %c1 = arith.constant 1 : index
    %12 = memref.load %arg2[%c1] : memref<16xi32, #tpu.memory_space<smem>>
    %13 = vector.broadcast %12 : i32 to vector<4x8xi32>
    %14 = arith.select %11, %13, %9 : vector<4x8xi1>, vector<4x8xi32>
    %15 = arith.cmpi slt, %3, %14 : vector<4x8xi32>
    %c-1_i32 = arith.constant -1 : i32
    %16 = vector.broadcast %c-1_i32 : i32 to vector<4x8xi32>
    %17 = arith.select %15, %1, %16 : vector<4x8xi1>, vector<4x8xi32>
    %18 = tpu.iota {dimensions = array<i32: 1>} : vector<4x16xi32>
    %c0_i32_5 = arith.constant 0 : i32
    %19 = vector.broadcast %c0_i32_5 : i32 to vector<4x16xi32>
    %c0_i32_6 = arith.constant 0 : i32
    %20 = vector.broadcast %c0_i32_6 : i32 to vector<4x16xi32>
    %c0_i32_7 = arith.constant 0 : i32
    %21 = vector.broadcast %c0_i32_7 : i32 to vector<4x16xi32>
    %c0_i32_8 = arith.constant 0 : i32
    %22 = vector.broadcast %c0_i32_8 : i32 to vector<4x16xi32>
    %23 = vector.extract_strided_slice %17 {offsets = [0, 0], sizes = [4, 1], strides = [1, 1]} : vector<4x8xi32> to vector<4x1xi32>
    %24 = vector.broadcast %23 : vector<4x1xi32> to vector<4x16xi32>
    %25 = arith.cmpi eq, %18, %24 : vector<4x16xi32>
    %26 = arith.extui %25 : vector<4x16xi1> to vector<4x16xi32>
    %27 = arith.addi %19, %26 : vector<4x16xi32>
    %28 = vector.extract_strided_slice %17 {offsets = [0, 1], sizes = [4, 1], strides = [1, 1]} : vector<4x8xi32> to vector<4x1xi32>
    %29 = vector.broadcast %28 : vector<4x1xi32> to vector<4x16xi32>
    %30 = arith.cmpi eq, %18, %29 : vector<4x16xi32>
    %31 = arith.extui %30 : vector<4x16xi1> to vector<4x16xi32>
    %32 = arith.addi %20, %31 : vector<4x16xi32>
    %33 = vector.extract_strided_slice %17 {offsets = [0, 2], sizes = [4, 1], strides = [1, 1]} : vector<4x8xi32> to vector<4x1xi32>
    %34 = vector.broadcast %33 : vector<4x1xi32> to vector<4x16xi32>
    %35 = arith.cmpi eq, %18, %34 : vector<4x16xi32>
    %36 = arith.extui %35 : vector<4x16xi1> to vector<4x16xi32>
    %37 = arith.addi %21, %36 : vector<4x16xi32>
    %38 = vector.extract_strided_slice %17 {offsets = [0, 3], sizes = [4, 1], strides = [1, 1]} : vector<4x8xi32> to vector<4x1xi32>
    %39 = vector.broadcast %38 : vector<4x1xi32> to vector<4x16xi32>
    %40 = arith.cmpi eq, %18, %39 : vector<4x16xi32>
    %41 = arith.extui %40 : vector<4x16xi1> to vector<4x16xi32>
    %42 = arith.addi %22, %41 : vector<4x16xi32>
    %43 = vector.extract_strided_slice %17 {offsets = [0, 4], sizes = [4, 1], strides = [1, 1]} : vector<4x8xi32> to vector<4x1xi32>
    %44 = vector.broadcast %43 : vector<4x1xi32> to vector<4x16xi32>
    %45 = arith.cmpi eq, %18, %44 : vector<4x16xi32>
    %46 = arith.extui %45 : vector<4x16xi1> to vector<4x16xi32>
    %47 = arith.addi %27, %46 : vector<4x16xi32>
    %48 = vector.extract_strided_slice %17 {offsets = [0, 5], sizes = [4, 1], strides = [1, 1]} : vector<4x8xi32> to vector<4x1xi32>
    %49 = vector.broadcast %48 : vector<4x1xi32> to vector<4x16xi32>
    %50 = arith.cmpi eq, %18, %49 : vector<4x16xi32>
    %51 = arith.extui %50 : vector<4x16xi1> to vector<4x16xi32>
    %52 = arith.addi %32, %51 : vector<4x16xi32>
    %53 = vector.extract_strided_slice %17 {offsets = [0, 6], sizes = [4, 1], strides = [1, 1]} : vector<4x8xi32> to vector<4x1xi32>
    %54 = vector.broadcast %53 : vector<4x1xi32> to vector<4x16xi32>
    %55 = arith.cmpi eq, %18, %54 : vector<4x16xi32>
    %56 = arith.extui %55 : vector<4x16xi1> to vector<4x16xi32>
    %57 = arith.addi %37, %56 : vector<4x16xi32>
    %58 = vector.extract_strided_slice %17 {offsets = [0, 7], sizes = [4, 1], strides = [1, 1]} : vector<4x8xi32> to vector<4x1xi32>
    %59 = vector.broadcast %58 : vector<4x1xi32> to vector<4x16xi32>
    %60 = arith.cmpi eq, %18, %59 : vector<4x16xi32>
    %61 = arith.extui %60 : vector<4x16xi1> to vector<4x16xi32>
    %62 = arith.addi %42, %61 : vector<4x16xi32>
    %63 = arith.addi %47, %52 : vector<4x16xi32>
    %64 = arith.addi %57, %62 : vector<4x16xi32>
    %65 = arith.addi %63, %64 : vector<4x16xi32>
    %66 = arith.sitofp %65 : vector<4x16xi32> to vector<4x16xf32>
    %cst = arith.constant 0.000000e+00 : f32
    %67 = vector.broadcast %cst : f32 to vector<4x16xf32>
    %68 = arith.cmpf ogt, %66, %67 : vector<4x16xf32>
    %cst_9 = arith.constant 0.000000e+00 : f32
    %69 = vector.broadcast %cst_9 : f32 to vector<4x16xf32>
    %70 = arith.select %68, %0, %69 : vector<4x16xi1>, vector<4x16xf32>
    %cst_10 = arith.constant 1.000000e+00 : f32
    %71 = vector.broadcast %cst_10 : f32 to vector<4x16xf32>
    %72 = arith.subf %71, %70 : vector<4x16xf32>
    %73 = math.log %72 : vector<4x16xf32>
    %74 = arith.mulf %66, %73 : vector<4x16xf32>
    %cst_11 = arith.constant dense<0.000000e+00> : vector<4xf32>
    %75 = vector.multi_reduction <add>, %74, %cst_11 [1] : vector<4x16xf32> to vector<4xf32>
    %76 = vector.shape_cast %75 : vector<4xf32> to vector<4x1xf32>
    %77 = math.exp %76 : vector<4x1xf32>
    %cst_12 = arith.constant 1.000000e+00 : f32
    %78 = vector.broadcast %cst_12 : f32 to vector<4x1xf32>
    %79 = arith.subf %78, %77 : vector<4x1xf32>
    %cst_13 = arith.constant dense<0.000000e+00> : vector<1xf32>
    %80 = vector.multi_reduction <add>, %79, %cst_13 [0] : vector<4x1xf32> to vector<1xf32>
    %81 = vector.shape_cast %80 : vector<1xf32> to vector<1x1xf32>
    %82 = vector.extract %81[0, 0] : f32 from vector<1x1xf32>
    %c0_14 = arith.constant 0 : index
    %83 = memref.load %arg3[%c0_14] : memref<1xf32, #tpu.memory_space<smem>>
    memref.store %82, %arg3[%c0_14] : memref<1xf32, #tpu.memory_space<smem>>
    return
  }
}

</mosaic_0001>

<bundles_post_ra>
// kernel: tpu_custom_call.1
= control target key start
LH: loop header
LB: loop body
LE: loop exit
PB: predicated region body
PF: predicated region fallthrough
CT: control target
= control target key end

     0   :  { %8 = vsyncpa [#allocation3], 0  ;;  %s314_s0 = inlined_call_operand.hbm [shape: f32[4,16], index: 0, kind: input, shape index: {}]   ;;  %s315_s1 = inlined_call_operand.hbm [shape: s32[4,8], index: 1, kind: input, shape index: {}]   ;;  %s316_s2 = inlined_call_operand.vmem [shape: s32[16], index: 2, kind: input, shape index: {}]   ;;  %s317_s3 = inlined_call_operand.hbm [shape: f32[1], index: 3, kind: output, shape index: {}]  }
   0x1   :  { %9 = vsyncpa [#allocation7], 0 }
   0x2   :  { %10 = vsyncpa [#allocation5], 0 }
   0x3   :  { %11 = vsyncpa [#allocation4], 0  ;;  %s17_s14 = sshll.u32 %s314_s0, 4  ;;  %s270_s15 = smov [#allocation2]   ;;  %s18_s14 = int_to_ptr.hbm [resolvable:$true] %s17_s14 }
   0x4   :  { %s19_s16 = sshll.u32 %s270_s15, 4  ;;  %s28_s19 = sshll.u32 %s315_s1, 4  ;;  %s20_s16 = int_to_ptr.vmem [resolvable:$true] %s19_s16  ;;  %s29_s19 = int_to_ptr.hbm [resolvable:$true] %s28_s19 }
   0x5   :  { %22 = dma.hbm_to_vmem [thread:$0]  %s18_s14, 64, %s20_s16, [#allocation3]  }
   0x6   :  { %s271_s20 = smov [#allocation6]   ;;  %s39_s24 = sshll.u32 %s316_s2, 4  ;;  %s40_s24 = int_to_ptr.vmem [resolvable:$true] %s39_s24 }
   0x7   :  { %s30_s21 = sshll.u32 %s271_s20, 4  ;;  %s272_s0 = smov [#allocation8]   ;;  %s31_s21 = int_to_ptr.vmem [resolvable:$true] %s30_s21 }
   0x8   :  { %33 = dma.hbm_to_vmem [thread:$0]  %s29_s19, 64, %s31_s21, [#allocation7]  }
   0x9   :  { %42 = dma.vmem_to_smem %s40_s24, 16, %s272_s0, [#allocation5]  }
   0xa   :  { %262 = dma.done.wait [#allocation3], 64  }
   0xb   :  { %263 = vsyncadd [#allocation3], 4294967232 }
   0xc   :  { %264 = dma.done.wait [#allocation7], 64  }
   0xd   :  { %265 = vsyncadd [#allocation7], 4294967232 }
   0xe   :  { %266 = dma.done.wait [#allocation5], 16  }
   0xf   :  { %267 = vsyncadd [#allocation5], 4294967280 }
  0x10   :  { %55 = sfence }
  0x11   :  { %v58_v0 = vlaneseq  ;;  %s63_s1 = sld [smem:[#allocation8]]  ;;  %v273_v1 = vmov 2   ;;  %v274_v2 = vmov 0   ;;  %v275_v4 = vmov 4   ;;  %v57_v7 = vld [vmem:[#allocation6] sm:$0xf] }
  0x12   :  { %179 = vset.pattern.permute.xlu1 %v273_v1  ;;  %177 = vset.pattern.permute.xlu0 %v274_v2  ;;  %s162_s25 = sld [smem:[#allocation8 + $0x1]]  ;;  %v276_v12 = vmov 3   ;;  %v277_v13 = vmov 1   ;;  %v278_v14 = vmov 5   ;;  %v279_v15 = vmov 6   ;;  %s149_s27 = sshll.u32 %s317_s3, 4  ;;  %s150_s27 = int_to_ptr.hbm [resolvable:$true] %s149_s27 }
  0x13   :  { %v59_v3 = vshrl.u32 %v58_v0, 7  ;;  %181 = vset.pattern.permute.xlu2 %v275_v4  ;;  %v61_v5 = vand.u32 127, %v58_v0  ;;  %v280_v16 = vmov 7   ;;  %v56_v40 = vld [vmem:[#allocation2] sm:$0xf]  ;;  %vm126_vm12 = vcmask 125952  }
  0x14   :  { %vm133_vm13 = vcmask 1043456   ;;  %s281_s29 = smov [#allocation9]  }
  0x15   :  { %vm62_vm0 = vcmp.eq.s32.totalorder %v59_v3, 0  ;;  %vm66_vm1 = vcmp.eq.s32.totalorder %v59_v3, 1 }
  0x17   :  { %v64_v6 = vstv %s63_s1 }
  0x18   :  { %v65_v8 = vsel %vm62_vm0, %v64_v6, 0  ;;  %v68_v9 = vstv %s162_s25 }
  0x19   :  { %v69_v10 = vsel %vm66_vm1, %v68_v9, %v65_v8 }
  0x1a   :  { %vm70_vm2 = vcmp.lt.s32.totalorder %v61_v5, %v69_v10 }
  0x1b   :  { %v71_v11 = vsel %vm70_vm2, %v57_v7, 4294967295 }
  0x1c   :  { %83 = vperm.xlu1 %179, %v71_v11   ;;  %73 = vperm.xlu0 %177, %v71_v11  }
  0x1d   :  { %93 = vperm.xlu2 %181, %v71_v11  }
  0x24   :  { %180 = vset.pattern.permute.xlu1 %v276_v12  ;;  %178 = vset.pattern.permute.xlu0 %v277_v13 }
  0x25   :  { %88 = vperm.xlu1 %180, %v71_v11   ;;  %78 = vperm.xlu0 %178, %v71_v11  }
  0x26   :  { %182 = vset.pattern.permute.xlu2 %v278_v14 }
  0x27   :  { %99 = vperm.xlu2 %182, %v71_v11  }
  0x2d   :  { %183 = vset.pattern.permute.xlu1 %v279_v15  ;;  %185 = vset.pattern.permute.xlu0 %v280_v16 }
  0x2e   :  { %105 = vperm.xlu1 %183, %v71_v11  }
  0x2f   :  { %184 = vset.pattern.permute.xlu2 %v280_v16 }
  0x30   :  { %111 = vperm.xlu2 %184, %v71_v11  }
  0x77   :  { %v94_v17 = vpop.permute.xlu2 %93 }
  0x78   :  { %vm95_vm5 = vcmp.eq.s32.totalorder %v61_v5, %v94_v17 }
  0x79   :  { %v96_v26 = vsel %vm95_vm5, 1, %v274_v2 }
  0x81   :  { %v100_v20 = vpop.permute.xlu2 %99 }
  0x82   :  { %vm101_vm3 = vcmp.eq.s32.totalorder %v61_v5, %v100_v20 }
  0x83   :  { %v102_v24 = vsel %vm101_vm3, 1, %v274_v2 }
  0x8a   :  { %v112_v23 = vpop.permute.xlu2 %111 }
  0x8b   :  { %vm113_vm7 = vcmp.eq.s32.totalorder %v61_v5, %v112_v23 }
  0x8c   :  { %v114_v28 = vsel %vm113_vm7, 1, %v274_v2 }
  0x8e   :  { %v84_v18 = vpop.permute.xlu1 %83  ;;  %v74_v19 = vpop.permute.xlu0 %73 }
  0x8f   :  { %vm75_vm6 = vcmp.eq.s32.totalorder %v61_v5, %v74_v19  ;;  %vm85_vm9 = vcmp.eq.s32.totalorder %v61_v5, %v84_v18 }
  0x90   :  { %v76_v27 = vsel %vm75_vm6, 1, %v274_v2  ;;  %v86_v32 = vsel %vm85_vm9, 1, %v274_v2 }
  0x91   :  { %v97_v34 = vadd.s32 %v96_v26, %v76_v27 }
  0x97   :  { %v89_v21 = vpop.permute.xlu1 %88  ;;  %v79_v22 = vpop.permute.xlu0 %78 }
  0x98   :  { %vm80_vm4 = vcmp.eq.s32.totalorder %v61_v5, %v79_v22  ;;  %vm90_vm8 = vcmp.eq.s32.totalorder %v61_v5, %v89_v21 }
  0x99   :  { %v81_v25 = vsel %vm80_vm4, 1, %v274_v2  ;;  %v91_v29 = vsel %vm90_vm8, 1, %v274_v2 }
  0x9a   :  { %v103_v31 = vadd.s32 %v102_v24, %v81_v25  ;;  %v115_v35 = vadd.s32 %v114_v28, %v91_v29 }
  0x9c   :  { %v116_v37 = vadd.s32 %v103_v31, %v97_v34 }
  0xa0   :  { %v106_v30 = vpop.permute.xlu1 %105 }
  0xa1   :  { %vm107_vm10 = vcmp.eq.s32.totalorder %v61_v5, %v106_v30 }
  0xa2   :  { %v108_v33 = vsel %vm107_vm10, 1, %v274_v2 }
  0xa3   :  { %v109_v36 = vadd.s32 %v108_v33, %v86_v32 }
  0xa5   :  { %v117_v38 = vadd.s32 %v115_v35, %v109_v36 }
  0xa7   :  { %v118_v39 = vadd.s32 %v117_v38, %v116_v37 }
  0xa9   :  { %v119_v41 = vcvt.s32.f32 %v118_v39 }
  0xab   :  { %vm120_vm11 = vcmp.gt.f32.partialorder %v119_v41, 0.0 }
  0xac   :  { %v121_v42 = vsel %vm120_vm11, %v56_v40, 0.0 }
  0xad   :  { %v122_v43 = vsub.f32 1.0, %v121_v42 }
  0xaf   :  { %186 = vlog2.f32 %v122_v43 }
  0xb5   :  { %v187_v44 = vpop.eup %186 }
  0xb6   :  { %v124_v45 = vmul.f32 0.6931472, %v187_v44 }
  0xb8   :  { %v125_v46 = vmul.f32 %v124_v45, %v119_v41 }
  0xba   :  { %v127_v47 = vsel %vm126_vm12, %v125_v46, 0.0 }
  0xbb   :  { %128 = vadd.xlane.f32.xlu0 %v127_v47 }
 0x12e   :  { %v129_v48 = vpop.xlane.xlu0 %128 }
 0x12f   :  { %v130_v49 = vmul.f32 1.442695, %v129_v48 }
 0x131   :  { %188 = vpow2.f32 %v130_v49 }
 0x137   :  { %v189_v50 = vpop.eup %188 }
 0x138   :  { %v132_v51 = vsub.f32 1.0, %v189_v50 }
 0x13a   :  { %v134_v52 = vsel %vm133_vm13, %v132_v51, 0.0 }
 0x13b   :  { %v135_v53 = vrot.slane %v134_v52, 4 }
 0x13d   :  { %v136_v54 = vadd.f32 %v135_v53, %v134_v52 }
 0x13f   :  { %v137_v55 = vrot.slane %v136_v54, 2 }
 0x141   :  { %v138_v56 = vadd.f32 %v137_v55, %v136_v54 }
 0x143   :  { %v139_v57 = vrot.slane %v138_v56, 1 }
 0x145   :  { %v140_v58 = vadd.f32 %v139_v57, %v138_v56 }
 0x147   :  { %163 = vpush %v140_v58 }
 0x178   :  { %s164_s28 = spop %163 }
 0x179   :  { %143 = sst [smem:[#allocation9]] %s164_s28 }
 0x17a   :  { %152 = dma.smem_to_hbm %s281_s29, 16, %s150_s27, [#allocation4]  }
 0x17b   :  { %268 = dma.done.wait [#allocation4], 16  }
 0x17c   :  { %269 = vsyncadd [#allocation4], 4294967280 }
 0x17d   :  { %157 = sfence }
 0x17e   :  { %158 = vsyncpa [#allocation3], 1 }
 0x17f   :  { %159 = vsyncpa [#allocation7], 1 }
 0x180   :  { %160 = vsyncpa [#allocation4], 1 }
 0x181   :  { %161 = vsyncpa [#allocation5], 1 }

</bundles_post_ra>
